<compile_context>
chip_gen: v7x
topology: tpu7x:2x2x1
jax: 0.10.0
libtpu: 0.0.40
codegen_flags: <defaults>
</compile_context>

<pallas_src>
import functools

import jax
import jax.numpy as jnp
from jax.experimental import pallas as pl
from jax.experimental.pallas import tpu as pltpu


def _gru_kernel(x_ref, wih_ref, whh_ref, bi_ref, bhn_ref, wfc_ref, bfc_ref,
                out_ref, gi_ref, *, seq_len, batch):
    """Refs:
      x_ref   : (T*B, I)   time-major flattened input (rows t*B:(t+1)*B = step t)
      wih_ref : (I, 3H)    concatenated input->gate weights [r|z|n]
      whh_ref : (H, 3H)    concatenated hidden->gate weights [r|z|n]
      bi_ref  : (1, 3H)    [b_ir+b_hr | b_iz+b_hz | b_in]
      bhn_ref : (1, H)     b_hn (must stay inside r*(...))
      wfc_ref : (H, O), bfc_ref: (1, O)
      out_ref : (B, O)
      gi_ref  : (T*B, 3H)  f32 scratch for the batched input projections
    """
    H = whh_ref.shape[0]

    # Phase 1 (time-parallel): all input projections in one wide MXU matmul,
    # r/z biases already folded, n-gate input bias included.
    gi_ref[...] = (
        jnp.dot(x_ref[...], wih_ref[...], preferred_element_type=jnp.float32)
        + bi_ref[...])

    # Hoist loop invariants (JAX does not CSE broadcasts inside loops).
    w_hh = whh_ref[...]          # (H, 3H)
    b_hn = bhn_ref[...]          # (1, H), f32

    def step(t, h_prev):
        row = pl.multiple_of(t * batch, batch)
        gi = gi_ref[pl.ds(row, batch), :]                          # (B, 3H) f32
        gh = jnp.dot(h_prev.astype(w_hh.dtype), w_hh,
                     preferred_element_type=jnp.float32)           # (B, 3H) f32
        r = jax.nn.sigmoid(gi[:, 0:H] + gh[:, 0:H])
        z = jax.nn.sigmoid(gi[:, H:2 * H] + gh[:, H:2 * H])
        n = jnp.tanh(gi[:, 2 * H:] + r * (gh[:, 2 * H:] + b_hn))
        return (1.0 - z) * n + z * h_prev

    h0 = jnp.zeros((batch, H), jnp.float32)      # PyTorch default h_0 = 0
    h_last = jax.lax.fori_loop(0, seq_len, step, h0, unroll=True)

    # Fused fc(out[:, -1, :]).
    out_ref[...] = (
        jnp.dot(h_last.astype(wfc_ref.dtype), wfc_ref[...],
                preferred_element_type=jnp.float32)
        + bfc_ref[...])


@functools.partial(jax.jit, static_argnames=("compute_dtype",))
def gru_model_forward(x, weight_ih, weight_hh, bias_ih, bias_hh,
                      fc_weight, fc_bias, *, compute_dtype=jnp.float32):
    """PyTorch-layout params:
      x: (B, T, I) f32, weight_ih: (3H, I), weight_hh: (3H, H),
      bias_ih/bias_hh: (3H,), fc_weight: (O, H), fc_bias: (O,).
    Returns (B, O) f32, matching GRUModel.forward.
    """
    B, T, I = x.shape
    H = weight_hh.shape[1]
    O = fc_weight.shape[0]

    # Time-major + flattened so the entire input projection is one matmul.
    x_tm = jnp.transpose(x, (1, 0, 2)).reshape(T * B, I).astype(compute_dtype)

    # Concatenated, pre-transposed gate weights (PyTorch gate order r, z, n).
    w_ih_cat = jnp.transpose(weight_ih).astype(compute_dtype)     # (I, 3H)
    w_hh_cat = jnp.transpose(weight_hh).astype(compute_dtype)     # (H, 3H)

    # Fold hidden biases into the input biases for r/z; keep b_hn separate.
    b_i_cat = jnp.concatenate([
        bias_ih[0:2 * H] + bias_hh[0:2 * H],      # r, z combined
        bias_ih[2 * H:3 * H],                     # n (input-side only)
    ]).reshape(1, 3 * H).astype(jnp.float32)
    b_hn = bias_hh[2 * H:3 * H].reshape(1, H).astype(jnp.float32)

    w_fc_t = jnp.transpose(fc_weight).astype(compute_dtype)       # (H, O)
    b_fc_2d = fc_bias.reshape(1, O).astype(jnp.float32)

    kernel = functools.partial(_gru_kernel, seq_len=T, batch=B)
    vmem = lambda: pl.BlockSpec(memory_space=pltpu.MemorySpace.VMEM)

    return pl.pallas_call(
        kernel,
        out_shape=jax.ShapeDtypeStruct((B, O), jnp.float32),
        in_specs=[vmem() for _ in range(7)],
        out_specs=vmem(),
        scratch_shapes=[pltpu.VMEM((T * B, 3 * H), jnp.float32)],
    )(x_tm, w_ih_cat, w_hh_cat, b_i_cat, b_hn, w_fc_t, b_fc_2d)


def _reference_forward(x, weight_ih, weight_hh, bias_ih, bias_hh,
                       fc_weight, fc_bias):
    """Pure-JAX reference implementing PyTorch GRU + Linear semantics."""
    B, T, I = x.shape
    H = weight_hh.shape[1]
    w_ir, w_iz, w_in = weight_ih[0:H], weight_ih[H:2 * H], weight_ih[2 * H:3 * H]
    w_hr, w_hz, w_hn = weight_hh[0:H], weight_hh[H:2 * H], weight_hh[2 * H:3 * H]
    b_ir, b_iz, b_in = bias_ih[0:H], bias_ih[H:2 * H], bias_ih[2 * H:3 * H]
    b_hr, b_hz, b_hn = bias_hh[0:H], bias_hh[H:2 * H], bias_hh[2 * H:3 * H]

    def step(h, x_t):
        r = jax.nn.sigmoid(x_t @ w_ir.T + b_ir + h @ w_hr.T + b_hr)
        z = jax.nn.sigmoid(x_t @ w_iz.T + b_iz + h @ w_hz.T + b_hz)
        n = jnp.tanh(x_t @ w_in.T + b_in + r * (h @ w_hn.T + b_hn))
        return (1.0 - z) * n + z * h, None

    h0 = jnp.zeros((B, H), jnp.float32)
    h_last, _ = jax.lax.scan(step, h0, jnp.transpose(x, (1, 0, 2)))
    return h_last @ fc_weight.T + fc_bias


if __name__ == "__main__":
    # Shapes consistent with the module: x (batch, seq, input_size),
    # hidden_size=32, output_size=1.
    B, T, I, H, O = 2, 8, 4, 32, 1

    key = jax.random.PRNGKey(0)
    ks = jax.random.split(key, 7)
    bound = float(1.0 / (H ** 0.5))  # PyTorch default init range

    x = jax.random.normal(ks[0], (B, T, I), dtype=jnp.float32)
    weight_ih = jax.random.uniform(ks[1], (3 * H, I), jnp.float32, -bound, bound)
    weight_hh = jax.random.uniform(ks[2], (3 * H, H), jnp.float32, -bound, bound)
    bias_ih = jax.random.uniform(ks[3], (3 * H,), jnp.float32, -bound, bound)
    bias_hh = jax.random.uniform(ks[4], (3 * H,), jnp.float32, -bound, bound)
    fc_weight = jax.random.uniform(ks[5], (O, H), jnp.float32, -bound, bound)
    fc_bias = jax.random.uniform(ks[6], (O,), jnp.float32, -bound, bound)

    ref = _reference_forward(x, weight_ih, weight_hh, bias_ih, bias_hh,
                             fc_weight, fc_bias)

    # f32 path (bit-for-bit semantics of the PyTorch module).
    out = gru_model_forward(x, weight_ih, weight_hh, bias_ih, bias_hh,
                            fc_weight, fc_bias)
    out = jax.block_until_ready(out)
    assert out.shape == (B, O)
    assert jnp.allclose(out, ref, atol=1e-5, rtol=1e-5)

    # bf16 MXU operands (f32 accumulation + f32 gate math), the recommended
    # dtype split on v5e/v6e/v7x; checked loosely against the f32 reference.
    out_bf16 = gru_model_forward(x, weight_ih, weight_hh, bias_ih, bias_hh,
                                 fc_weight, fc_bias,
                                 compute_dtype=jnp.bfloat16)
    out_bf16 = jax.block_until_ready(out_bf16)
    assert jnp.allclose(out_bf16, ref, atol=5e-2, rtol=5e-2)

    print("KERNEL_OK")
</pallas_src>

<mosaic_0001>
module attributes {stable_mosaic.version = 11 : i64} {
  func.func @_gru_kernel(%arg0: memref<16x4xf32, #tpu.memory_space<vmem>>, %arg1: memref<4x96xf32, #tpu.memory_space<vmem>>, %arg2: memref<32x96xf32, #tpu.memory_space<vmem>>, %arg3: memref<1x96xf32, #tpu.memory_space<vmem>>, %arg4: memref<1x32xf32, #tpu.memory_space<vmem>>, %arg5: memref<32x1xf32, #tpu.memory_space<vmem>>, %arg6: memref<1x1xf32, #tpu.memory_space<vmem>>, %arg7: memref<2x1xf32, #tpu.memory_space<vmem>>, %arg8: memref<16x96xf32, #tpu.memory_space<vmem>>) attributes {dimension_semantics = [], scalar_prefetch = 0 : i64, scratch_operands = 1 : i64, tpu.core_type = #tpu.core_type<tc>} {
    %c0 = arith.constant 0 : index
    %c0_0 = arith.constant 0 : index
    %0 = vector.load %arg0[%c0, %c0_0] : memref<16x4xf32, #tpu.memory_space<vmem>>, vector<16x4xf32>
    %c0_1 = arith.constant 0 : index
    %c0_2 = arith.constant 0 : index
    %1 = vector.load %arg1[%c0_1, %c0_2] : memref<4x96xf32, #tpu.memory_space<vmem>>, vector<4x96xf32>
    %cst = arith.constant dense<0.000000e+00> : vector<16x96xf32>
    %2 = tpu.matmul %0, %1, %cst {dimension_numbers = #tpu.dot_dimension_numbers<[1], [0], [0], [1], [0, 0, 1, 1], [], []>} : vector<16x4xf32>, vector<4x96xf32>, vector<16x96xf32> -> vector<16x96xf32>
    %c0_3 = arith.constant 0 : index
    %c0_4 = arith.constant 0 : index
    %3 = vector.load %arg3[%c0_3, %c0_4] : memref<1x96xf32, #tpu.memory_space<vmem>>, vector<1x96xf32>
    %4 = vector.broadcast %3 : vector<1x96xf32> to vector<16x96xf32>
    %5 = arith.addf %2, %4 : vector<16x96xf32>
    %c0_5 = arith.constant 0 : index
    %c0_6 = arith.constant 0 : index
    %6 = vector.load %arg8[%c0_5, %c0_6] : memref<16x96xf32, #tpu.memory_space<vmem>>, vector<16x96xf32>
    tpu.vector_store %arg8[%c0_5, %c0_6], %5 {strides = array<i32>} : memref<16x96xf32, #tpu.memory_space<vmem>>, vector<16x96xf32>,
    %c0_7 = arith.constant 0 : index
    %c0_8 = arith.constant 0 : index
    %7 = vector.load %arg2[%c0_7, %c0_8] : memref<32x96xf32, #tpu.memory_space<vmem>>, vector<32x96xf32>
    %c0_9 = arith.constant 0 : index
    %c0_10 = arith.constant 0 : index
    %8 = vector.load %arg4[%c0_9, %c0_10] : memref<1x32xf32, #tpu.memory_space<vmem>>, vector<1x32xf32>
    %cst_11 = arith.constant 0.000000e+00 : f32
    %9 = vector.broadcast %cst_11 : f32 to vector<2x32xf32>
    %c0_i32 = arith.constant 0 : i32
    %c2_i32 = arith.constant 2 : i32
    %10 = arith.muli %c0_i32, %c2_i32 : i32
    %11 = tpu.assume_multiple %10, 2 : i32
    %12 = arith.index_cast %11 : i32 to index
    %c0_12 = arith.constant 0 : index
    %13 = vector.load %arg8[%12, %c0_12] : memref<16x96xf32, #tpu.memory_space<vmem>>, vector<2x96xf32>
    %cst_13 = arith.constant dense<0.000000e+00> : vector<2x96xf32>
    %14 = tpu.matmul %9, %7, %cst_13 {dimension_numbers = #tpu.dot_dimension_numbers<[1], [0], [0], [1], [0, 0, 1, 1], [], []>} : vector<2x32xf32>, vector<32x96xf32>, vector<2x96xf32> -> vector<2x96xf32>
    %15 = vector.extract_strided_slice %13 {offsets = [0, 0], sizes = [2, 32], strides = [1, 1]} : vector<2x96xf32> to vector<2x32xf32>
    %16 = vector.extract_strided_slice %14 {offsets = [0, 0], sizes = [2, 32], strides = [1, 1]} : vector<2x96xf32> to vector<2x32xf32>
    %17 = arith.addf %15, %16 : vector<2x32xf32>
    %18 = arith.negf %17 : vector<2x32xf32>
    %19 = math.exp %18 : vector<2x32xf32>
    %cst_14 = arith.constant 1.000000e+00 : f32
    %20 = vector.broadcast %cst_14 : f32 to vector<2x32xf32>
    %21 = arith.addf %20, %19 : vector<2x32xf32>
    %22 = arith.divf %20, %21 : vector<2x32xf32>
    %23 = vector.extract_strided_slice %13 {offsets = [0, 32], sizes = [2, 32], strides = [1, 1]} : vector<2x96xf32> to vector<2x32xf32>
    %24 = vector.extract_strided_slice %14 {offsets = [0, 32], sizes = [2, 32], strides = [1, 1]} : vector<2x96xf32> to vector<2x32xf32>
    %25 = arith.addf %23, %24 : vector<2x32xf32>
    %26 = arith.negf %25 : vector<2x32xf32>
    %27 = math.exp %26 : vector<2x32xf32>
    %cst_15 = arith.constant 1.000000e+00 : f32
    %28 = vector.broadcast %cst_15 : f32 to vector<2x32xf32>
    %29 = arith.addf %28, %27 : vector<2x32xf32>
    %30 = arith.divf %28, %29 : vector<2x32xf32>
    %31 = vector.extract_strided_slice %13 {offsets = [0, 64], sizes = [2, 32], strides = [1, 1]} : vector<2x96xf32> to vector<2x32xf32>
    %32 = vector.extract_strided_slice %14 {offsets = [0, 64], sizes = [2, 32], strides = [1, 1]} : vector<2x96xf32> to vector<2x32xf32>
    %33 = vector.broadcast %8 : vector<1x32xf32> to vector<2x32xf32>
    %34 = arith.addf %32, %33 : vector<2x32xf32>
    %35 = arith.mulf %22, %34 : vector<2x32xf32>
    %36 = arith.addf %31, %35 : vector<2x32xf32>
    %37 = math.tanh %36 : vector<2x32xf32>
    %cst_16 = arith.constant 1.000000e+00 : f32
    %38 = vector.broadcast %cst_16 : f32 to vector<2x32xf32>
    %39 = arith.subf %38, %30 : vector<2x32xf32>
    %40 = arith.mulf %39, %37 : vector<2x32xf32>
    %41 = arith.mulf %30, %9 : vector<2x32xf32>
    %42 = arith.addf %40, %41 : vector<2x32xf32>
    %c1_i32 = arith.constant 1 : i32
    %c2_i32_17 = arith.constant 2 : i32
    %43 = arith.muli %c1_i32, %c2_i32_17 : i32
    %44 = tpu.assume_multiple %43, 2 : i32
    %45 = arith.index_cast %44 : i32 to index
    %c0_18 = arith.constant 0 : index
    %46 = vector.load %arg8[%45, %c0_18] : memref<16x96xf32, #tpu.memory_space<vmem>>, vector<2x96xf32>
    %cst_19 = arith.constant dense<0.000000e+00> : vector<2x96xf32>
    %47 = tpu.matmul %42, %7, %cst_19 {dimension_numbers = #tpu.dot_dimension_numbers<[1], [0], [0], [1], [0, 0, 1, 1], [], []>} : vector<2x32xf32>, vector<32x96xf32>, vector<2x96xf32> -> vector<2x96xf32>
    %48 = vector.extract_strided_slice %46 {offsets = [0, 0], sizes = [2, 32], strides = [1, 1]} : vector<2x96xf32> to vector<2x32xf32>
    %49 = vector.extract_strided_slice %47 {offsets = [0, 0], sizes = [2, 32], strides = [1, 1]} : vector<2x96xf32> to vector<2x32xf32>
    %50 = arith.addf %48, %49 : vector<2x32xf32>
    %51 = arith.negf %50 : vector<2x32xf32>
    %52 = math.exp %51 : vector<2x32xf32>
    %cst_20 = arith.constant 1.000000e+00 : f32
    %53 = vector.broadcast %cst_20 : f32 to vector<2x32xf32>
    %54 = arith.addf %53, %52 : vector<2x32xf32>
    %55 = arith.divf %53, %54 : vector<2x32xf32>
    %56 = vector.extract_strided_slice %46 {offsets = [0, 32], sizes = [2, 32], strides = [1, 1]} : vector<2x96xf32> to vector<2x32xf32>
    %57 = vector.extract_strided_slice %47 {offsets = [0, 32], sizes = [2, 32], strides = [1, 1]} : vector<2x96xf32> to vector<2x32xf32>
    %58 = arith.addf %56, %57 : vector<2x32xf32>
    %59 = arith.negf %58 : vector<2x32xf32>
    %60 = math.exp %59 : vector<2x32xf32>
    %cst_21 = arith.constant 1.000000e+00 : f32
    %61 = vector.broadcast %cst_21 : f32 to vector<2x32xf32>
    %62 = arith.addf %61, %60 : vector<2x32xf32>
    %63 = arith.divf %61, %62 : vector<2x32xf32>
    %64 = vector.extract_strided_slice %46 {offsets = [0, 64], sizes = [2, 32], strides = [1, 1]} : vector<2x96xf32> to vector<2x32xf32>
    %65 = vector.extract_strided_slice %47 {offsets = [0, 64], sizes = [2, 32], strides = [1, 1]} : vector<2x96xf32> to vector<2x32xf32>
    %66 = vector.broadcast %8 : vector<1x32xf32> to vector<2x32xf32>
    %67 = arith.addf %65, %66 : vector<2x32xf32>
    %68 = arith.mulf %55, %67 : vector<2x32xf32>
    %69 = arith.addf %64, %68 : vector<2x32xf32>
    %70 = math.tanh %69 : vector<2x32xf32>
    %cst_22 = arith.constant 1.000000e+00 : f32
    %71 = vector.broadcast %cst_22 : f32 to vector<2x32xf32>
    %72 = arith.subf %71, %63 : vector<2x32xf32>
    %73 = arith.mulf %72, %70 : vector<2x32xf32>
    %74 = arith.mulf %63, %42 : vector<2x32xf32>
    %75 = arith.addf %73, %74 : vector<2x32xf32>
    %c2_i32_23 = arith.constant 2 : i32
    %c2_i32_24 = arith.constant 2 : i32
    %76 = arith.muli %c2_i32_23, %c2_i32_24 : i32
    %77 = tpu.assume_multiple %76, 2 : i32
    %78 = arith.index_cast %77 : i32 to index
    %c0_25 = arith.constant 0 : index
    %79 = vector.load %arg8[%78, %c0_25] : memref<16x96xf32, #tpu.memory_space<vmem>>, vector<2x96xf32>
    %cst_26 = arith.constant dense<0.000000e+00> : vector<2x96xf32>
    %80 = tpu.matmul %75, %7, %cst_26 {dimension_numbers = #tpu.dot_dimension_numbers<[1], [0], [0], [1], [0, 0, 1, 1], [], []>} : vector<2x32xf32>, vector<32x96xf32>, vector<2x96xf32> -> vector<2x96xf32>
    %81 = vector.extract_strided_slice %79 {offsets = [0, 0], sizes = [2, 32], strides = [1, 1]} : vector<2x96xf32> to vector<2x32xf32>
    %82 = vector.extract_strided_slice %80 {offsets = [0, 0], sizes = [2, 32], strides = [1, 1]} : vector<2x96xf32> to vector<2x32xf32>
    %83 = arith.addf %81, %82 : vector<2x32xf32>
    %84 = arith.negf %83 : vector<2x32xf32>
    %85 = math.exp %84 : vector<2x32xf32>
    %cst_27 = arith.constant 1.000000e+00 : f32
    %86 = vector.broadcast %cst_27 : f32 to vector<2x32xf32>
    %87 = arith.addf %86, %85 : vector<2x32xf32>
    %88 = arith.divf %86, %87 : vector<2x32xf32>
    %89 = vector.extract_strided_slice %79 {offsets = [0, 32], sizes = [2, 32], strides = [1, 1]} : vector<2x96xf32> to vector<2x32xf32>
    %90 = vector.extract_strided_slice %80 {offsets = [0, 32], sizes = [2, 32], strides = [1, 1]} : vector<2x96xf32> to vector<2x32xf32>
    %91 = arith.addf %89, %90 : vector<2x32xf32>
    %92 = arith.negf %91 : vector<2x32xf32>
    %93 = math.exp %92 : vector<2x32xf32>
    %cst_28 = arith.constant 1.000000e+00 : f32
    %94 = vector.broadcast %cst_28 : f32 to vector<2x32xf32>
    %95 = arith.addf %94, %93 : vector<2x32xf32>
    %96 = arith.divf %94, %95 : vector<2x32xf32>
    %97 = vector.extract_strided_slice %79 {offsets = [0, 64], sizes = [2, 32], strides = [1, 1]} : vector<2x96xf32> to vector<2x32xf32>
    %98 = vector.extract_strided_slice %80 {offsets = [0, 64], sizes = [2, 32], strides = [1, 1]} : vector<2x96xf32> to vector<2x32xf32>
    %99 = vector.broadcast %8 : vector<1x32xf32> to vector<2x32xf32>
    %100 = arith.addf %98, %99 : vector<2x32xf32>
    %101 = arith.mulf %88, %100 : vector<2x32xf32>
    %102 = arith.addf %97, %101 : vector<2x32xf32>
    %103 = math.tanh %102 : vector<2x32xf32>
    %cst_29 = arith.constant 1.000000e+00 : f32
    %104 = vector.broadcast %cst_29 : f32 to vector<2x32xf32>
    %105 = arith.subf %104, %96 : vector<2x32xf32>
    %106 = arith.mulf %105, %103 : vector<2x32xf32>
    %107 = arith.mulf %96, %75 : vector<2x32xf32>
    %108 = arith.addf %106, %107 : vector<2x32xf32>
    %c3_i32 = arith.constant 3 : i32
    %c2_i32_30 = arith.constant 2 : i32
    %109 = arith.muli %c3_i32, %c2_i32_30 : i32
    %110 = tpu.assume_multiple %109, 2 : i32
    %111 = arith.index_cast %110 : i32 to index
    %c0_31 = arith.constant 0 : index
    %112 = vector.load %arg8[%111, %c0_31] : memref<16x96xf32, #tpu.memory_space<vmem>>, vector<2x96xf32>
    %cst_32 = arith.constant dense<0.000000e+00> : vector<2x96xf32>
    %113 = tpu.matmul %108, %7, %cst_32 {dimension_numbers = #tpu.dot_dimension_numbers<[1], [0], [0], [1], [0, 0, 1, 1], [], []>} : vector<2x32xf32>, vector<32x96xf32>, vector<2x96xf32> -> vector<2x96xf32>
    %114 = vector.extract_strided_slice %112 {offsets = [0, 0], sizes = [2, 32], strides = [1, 1]} : vector<2x96xf32> to vector<2x32xf32>
    %115 = vector.extract_strided_slice %113 {offsets = [0, 0], sizes = [2, 32], strides = [1, 1]} : vector<2x96xf32> to vector<2x32xf32>
    %116 = arith.addf %114, %115 : vector<2x32xf32>
    %117 = arith.negf %116 : vector<2x32xf32>
    %118 = math.exp %117 : vector<2x32xf32>
    %cst_33 = arith.constant 1.000000e+00 : f32
    %119 = vector.broadcast %cst_33 : f32 to vector<2x32xf32>
    %120 = arith.addf %119, %118 : vector<2x32xf32>
    %121 = arith.divf %119, %120 : vector<2x32xf32>
    %122 = vector.extract_strided_slice %112 {offsets = [0, 32], sizes = [2, 32], strides = [1, 1]} : vector<2x96xf32> to vector<2x32xf32>
    %123 = vector.extract_strided_slice %113 {offsets = [0, 32], sizes = [2, 32], strides = [1, 1]} : vector<2x96xf32> to vector<2x32xf32>
    %124 = arith.addf %122, %123 : vector<2x32xf32>
    %125 = arith.negf %124 : vector<2x32xf32>
    %126 = math.exp %125 : vector<2x32xf32>
    %cst_34 = arith.constant 1.000000e+00 : f32
    %127 = vector.broadcast %cst_34 : f32 to vector<2x32xf32>
    %128 = arith.addf %127, %126 : vector<2x32xf32>
    %129 = arith.divf %127, %128 : vector<2x32xf32>
    %130 = vector.extract_strided_slice %112 {offsets = [0, 64], sizes = [2, 32], strides = [1, 1]} : vector<2x96xf32> to vector<2x32xf32>
    %131 = vector.extract_strided_slice %113 {offsets = [0, 64], sizes = [2, 32], strides = [1, 1]} : vector<2x96xf32> to vector<2x32xf32>
    %132 = vector.broadcast %8 : vector<1x32xf32> to vector<2x32xf32>
    %133 = arith.addf %131, %132 : vector<2x32xf32>
    %134 = arith.mulf %121, %133 : vector<2x32xf32>
    %135 = arith.addf %130, %134 : vector<2x32xf32>
    %136 = math.tanh %135 : vector<2x32xf32>
    %cst_35 = arith.constant 1.000000e+00 : f32
    %137 = vector.broadcast %cst_35 : f32 to vector<2x32xf32>
    %138 = arith.subf %137, %129 : vector<2x32xf32>
    %139 = arith.mulf %138, %136 : vector<2x32xf32>
    %140 = arith.mulf %129, %108 : vector<2x32xf32>
    %141 = arith.addf %139, %140 : vector<2x32xf32>
    %c4_i32 = arith.constant 4 : i32
    %c2_i32_36 = arith.constant 2 : i32
    %142 = arith.muli %c4_i32, %c2_i32_36 : i32
    %143 = tpu.assume_multiple %142, 2 : i32
    %144 = arith.index_cast %143 : i32 to index
    %c0_37 = arith.constant 0 : index
    %145 = vector.load %arg8[%144, %c0_37] : memref<16x96xf32, #tpu.memory_space<vmem>>, vector<2x96xf32>
    %cst_38 = arith.constant dense<0.000000e+00> : vector<2x96xf32>
    %146 = tpu.matmul %141, %7, %cst_38 {dimension_numbers = #tpu.dot_dimension_numbers<[1], [0], [0], [1], [0, 0, 1, 1], [], []>} : vector<2x32xf32>, vector<32x96xf32>, vector<2x96xf32> -> vector<2x96xf32>
    %147 = vector.extract_strided_slice %145 {offsets = [0, 0], sizes = [2, 32], strides = [1, 1]} : vector<2x96xf32> to vector<2x32xf32>
    %148 = vector.extract_strided_slice %146 {offsets = [0, 0], sizes = [2, 32], strides = [1, 1]} : vector<2x96xf32> to vector<2x32xf32>
    %149 = arith.addf %147, %148 : vector<2x32xf32>
    %150 = arith.negf %149 : vector<2x32xf32>
    %151 = math.exp %150 : vector<2x32xf32>
    %cst_39 = arith.constant 1.000000e+00 : f32
    %152 = vector.broadcast %cst_39 : f32 to vector<2x32xf32>
    %153 = arith.addf %152, %151 : vector<2x32xf32>
    %154 = arith.divf %152, %153 : vector<2x32xf32>
    %155 = vector.extract_strided_slice %145 {offsets = [0, 32], sizes = [2, 32], strides = [1, 1]} : vector<2x96xf32> to vector<2x32xf32>
    %156 = vector.extract_strided_slice %146 {offsets = [0, 32], sizes = [2, 32], strides = [1, 1]} : vector<2x96xf32> to vector<2x32xf32>
    %157 = arith.addf %155, %156 : vector<2x32xf32>
    %158 = arith.negf %157 : vector<2x32xf32>
    %159 = math.exp %158 : vector<2x32xf32>
    %cst_40 = arith.constant 1.000000e+00 : f32
    %160 = vector.broadcast %cst_40 : f32 to vector<2x32xf32>
    %161 = arith.addf %160, %159 : vector<2x32xf32>
    %162 = arith.divf %160, %161 : vector<2x32xf32>
    %163 = vector.extract_strided_slice %145 {offsets = [0, 64], sizes = [2, 32], strides = [1, 1]} : vector<2x96xf32> to vector<2x32xf32>
    %164 = vector.extract_strided_slice %146 {offsets = [0, 64], sizes = [2, 32], strides = [1, 1]} : vector<2x96xf32> to vector<2x32xf32>
    %165 = vector.broadcast %8 : vector<1x32xf32> to vector<2x32xf32>
    %166 = arith.addf %164, %165 : vector<2x32xf32>
    %167 = arith.mulf %154, %166 : vector<2x32xf32>
    %168 = arith.addf %163, %167 : vector<2x32xf32>
    %169 = math.tanh %168 : vector<2x32xf32>
    %cst_41 = arith.constant 1.000000e+00 : f32
    %170 = vector.broadcast %cst_41 : f32 to vector<2x32xf32>
    %171 = arith.subf %170, %162 : vector<2x32xf32>
    %172 = arith.mulf %171, %169 : vector<2x32xf32>
    %173 = arith.mulf %162, %141 : vector<2x32xf32>
    %174 = arith.addf %172, %173 : vector<2x32xf32>
    %c5_i32 = arith.constant 5 : i32
    %c2_i32_42 = arith.constant 2 : i32
    %175 = arith.muli %c5_i32, %c2_i32_42 : i32
    %176 = tpu.assume_multiple %175, 2 : i32
    %177 = arith.index_cast %176 : i32 to index
    %c0_43 = arith.constant 0 : index
    %178 = vector.load %arg8[%177, %c0_43] : memref<16x96xf32, #tpu.memory_space<vmem>>, vector<2x96xf32>
    %cst_44 = arith.constant dense<0.000000e+00> : vector<2x96xf32>
    %179 = tpu.matmul %174, %7, %cst_44 {dimension_numbers = #tpu.dot_dimension_numbers<[1], [0], [0], [1], [0, 0, 1, 1], [], []>} : vector<2x32xf32>, vector<32x96xf32>, vector<2x96xf32> -> vector<2x96xf32>
    %180 = vector.extract_strided_slice %178 {offsets = [0, 0], sizes = [2, 32], strides = [1, 1]} : vector<2x96xf32> to vector<2x32xf32>
    %181 = vector.extract_strided_slice %179 {offsets = [0, 0], sizes = [2, 32], strides = [1, 1]} : vector<2x96xf32> to vector<2x32xf32>
    %182 = arith.addf %180, %181 : vector<2x32xf32>
    %183 = arith.negf %182 : vector<2x32xf32>
    %184 = math.exp %183 : vector<2x32xf32>
    %cst_45 = arith.constant 1.000000e+00 : f32
    %185 = vector.broadcast %cst_45 : f32 to vector<2x32xf32>
    %186 = arith.addf %185, %184 : vector<2x32xf32>
    %187 = arith.divf %185, %186 : vector<2x32xf32>
    %188 = vector.extract_strided_slice %178 {offsets = [0, 32], sizes = [2, 32], strides = [1, 1]} : vector<2x96xf32> to vector<2x32xf32>
    %189 = vector.extract_strided_slice %179 {offsets = [0, 32], sizes = [2, 32], strides = [1, 1]} : vector<2x96xf32> to vector<2x32xf32>
    %190 = arith.addf %188, %189 : vector<2x32xf32>
    %191 = arith.negf %190 : vector<2x32xf32>
    %192 = math.exp %191 : vector<2x32xf32>
    %cst_46 = arith.constant 1.000000e+00 : f32
    %193 = vector.broadcast %cst_46 : f32 to vector<2x32xf32>
    %194 = arith.addf %193, %192 : vector<2x32xf32>
    %195 = arith.divf %193, %194 : vector<2x32xf32>
    %196 = vector.extract_strided_slice %178 {offsets = [0, 64], sizes = [2, 32], strides = [1, 1]} : vector<2x96xf32> to vector<2x32xf32>
    %197 = vector.extract_strided_slice %179 {offsets = [0, 64], sizes = [2, 32], strides = [1, 1]} : vector<2x96xf32> to vector<2x32xf32>
    %198 = vector.broadcast %8 : vector<1x32xf32> to vector<2x32xf32>
    %199 = arith.addf %197, %198 : vector<2x32xf32>
    %200 = arith.mulf %187, %199 : vector<2x32xf32>
    %201 = arith.addf %196, %200 : vector<2x32xf32>
    %202 = math.tanh %201 : vector<2x32xf32>
    %cst_47 = arith.constant 1.000000e+00 : f32
    %203 = vector.broadcast %cst_47 : f32 to vector<2x32xf32>
    %204 = arith.subf %203, %195 : vector<2x32xf32>
    %205 = arith.mulf %204, %202 : vector<2x32xf32>
    %206 = arith.mulf %195, %174 : vector<2x32xf32>
    %207 = arith.addf %205, %206 : vector<2x32xf32>
    %c6_i32 = arith.constant 6 : i32
    %c2_i32_48 = arith.constant 2 : i32
    %208 = arith.muli %c6_i32, %c2_i32_48 : i32
    %209 = tpu.assume_multiple %208, 2 : i32
    %210 = arith.index_cast %209 : i32 to index
    %c0_49 = arith.constant 0 : index
    %211 = vector.load %arg8[%210, %c0_49] : memref<16x96xf32, #tpu.memory_space<vmem>>, vector<2x96xf32>
    %cst_50 = arith.constant dense<0.000000e+00> : vector<2x96xf32>
    %212 = tpu.matmul %207, %7, %cst_50 {dimension_numbers = #tpu.dot_dimension_numbers<[1], [0], [0], [1], [0, 0, 1, 1], [], []>} : vector<2x32xf32>, vector<32x96xf32>, vector<2x96xf32> -> vector<2x96xf32>
    %213 = vector.extract_strided_slice %211 {offsets = [0, 0], sizes = [2, 32], strides = [1, 1]} : vector<2x96xf32> to vector<2x32xf32>
    %214 = vector.extract_strided_slice %212 {offsets = [0, 0], sizes = [2, 32], strides = [1, 1]} : vector<2x96xf32> to vector<2x32xf32>
    %215 = arith.addf %213, %214 : vector<2x32xf32>
    %216 = arith.negf %215 : vector<2x32xf32>
    %217 = math.exp %216 : vector<2x32xf32>
    %cst_51 = arith.constant 1.000000e+00 : f32
    %218 = vector.broadcast %cst_51 : f32 to vector<2x32xf32>
    %219 = arith.addf %218, %217 : vector<2x32xf32>
    %220 = arith.divf %218, %219 : vector<2x32xf32>
    %221 = vector.extract_strided_slice %211 {offsets = [0, 32], sizes = [2, 32], strides = [1, 1]} : vector<2x96xf32> to vector<2x32xf32>
    %222 = vector.extract_strided_slice %212 {offsets = [0, 32], sizes = [2, 32], strides = [1, 1]} : vector<2x96xf32> to vector<2x32xf32>
    %223 = arith.addf %221, %222 : vector<2x32xf32>
    %224 = arith.negf %223 : vector<2x32xf32>
    %225 = math.exp %224 : vector<2x32xf32>
    %cst_52 = arith.constant 1.000000e+00 : f32
    %226 = vector.broadcast %cst_52 : f32 to vector<2x32xf32>
    %227 = arith.addf %226, %225 : vector<2x32xf32>
    %228 = arith.divf %226, %227 : vector<2x32xf32>
    %229 = vector.extract_strided_slice %211 {offsets = [0, 64], sizes = [2, 32], strides = [1, 1]} : vector<2x96xf32> to vector<2x32xf32>
    %230 = vector.extract_strided_slice %212 {offsets = [0, 64], sizes = [2, 32], strides = [1, 1]} : vector<2x96xf32> to vector<2x32xf32>
    %231 = vector.broadcast %8 : vector<1x32xf32> to vector<2x32xf32>
    %232 = arith.addf %230, %231 : vector<2x32xf32>
    %233 = arith.mulf %220, %232 : vector<2x32xf32>
    %234 = arith.addf %229, %233 : vector<2x32xf32>
    %235 = math.tanh %234 : vector<2x32xf32>
    %cst_53 = arith.constant 1.000000e+00 : f32
    %236 = vector.broadcast %cst_53 : f32 to vector<2x32xf32>
    %237 = arith.subf %236, %228 : vector<2x32xf32>
    %238 = arith.mulf %237, %235 : vector<2x32xf32>
    %239 = arith.mulf %228, %207 : vector<2x32xf32>
    %240 = arith.addf %238, %239 : vector<2x32xf32>
    %c7_i32 = arith.constant 7 : i32
    %c2_i32_54 = arith.constant 2 : i32
    %241 = arith.muli %c7_i32, %c2_i32_54 : i32
    %242 = tpu.assume_multiple %241, 2 : i32
    %243 = arith.index_cast %242 : i32 to index
    %c0_55 = arith.constant 0 : index
    %244 = vector.load %arg8[%243, %c0_55] : memref<16x96xf32, #tpu.memory_space<vmem>>, vector<2x96xf32>
    %cst_56 = arith.constant dense<0.000000e+00> : vector<2x96xf32>
    %245 = tpu.matmul %240, %7, %cst_56 {dimension_numbers = #tpu.dot_dimension_numbers<[1], [0], [0], [1], [0, 0, 1, 1], [], []>} : vector<2x32xf32>, vector<32x96xf32>, vector<2x96xf32> -> vector<2x96xf32>
    %246 = vector.extract_strided_slice %244 {offsets = [0, 0], sizes = [2, 32], strides = [1, 1]} : vector<2x96xf32> to vector<2x32xf32>
    %247 = vector.extract_strided_slice %245 {offsets = [0, 0], sizes = [2, 32], strides = [1, 1]} : vector<2x96xf32> to vector<2x32xf32>
    %248 = arith.addf %246, %247 : vector<2x32xf32>
    %249 = arith.negf %248 : vector<2x32xf32>
    %250 = math.exp %249 : vector<2x32xf32>
    %cst_57 = arith.constant 1.000000e+00 : f32
    %251 = vector.broadcast %cst_57 : f32 to vector<2x32xf32>
    %252 = arith.addf %251, %250 : vector<2x32xf32>
    %253 = arith.divf %251, %252 : vector<2x32xf32>
    %254 = vector.extract_strided_slice %244 {offsets = [0, 32], sizes = [2, 32], strides = [1, 1]} : vector<2x96xf32> to vector<2x32xf32>
    %255 = vector.extract_strided_slice %245 {offsets = [0, 32], sizes = [2, 32], strides = [1, 1]} : vector<2x96xf32> to vector<2x32xf32>
    %256 = arith.addf %254, %255 : vector<2x32xf32>
    %257 = arith.negf %256 : vector<2x32xf32>
    %258 = math.exp %257 : vector<2x32xf32>
    %cst_58 = arith.constant 1.000000e+00 : f32
    %259 = vector.broadcast %cst_58 : f32 to vector<2x32xf32>
    %260 = arith.addf %259, %258 : vector<2x32xf32>
    %261 = arith.divf %259, %260 : vector<2x32xf32>
    %262 = vector.extract_strided_slice %244 {offsets = [0, 64], sizes = [2, 32], strides = [1, 1]} : vector<2x96xf32> to vector<2x32xf32>
    %263 = vector.extract_strided_slice %245 {offsets = [0, 64], sizes = [2, 32], strides = [1, 1]} : vector<2x96xf32> to vector<2x32xf32>
    %264 = vector.broadcast %8 : vector<1x32xf32> to vector<2x32xf32>
    %265 = arith.addf %263, %264 : vector<2x32xf32>
    %266 = arith.mulf %253, %265 : vector<2x32xf32>
    %267 = arith.addf %262, %266 : vector<2x32xf32>
    %268 = math.tanh %267 : vector<2x32xf32>
    %cst_59 = arith.constant 1.000000e+00 : f32
    %269 = vector.broadcast %cst_59 : f32 to vector<2x32xf32>
    %270 = arith.subf %269, %261 : vector<2x32xf32>
    %271 = arith.mulf %270, %268 : vector<2x32xf32>
    %272 = arith.mulf %261, %240 : vector<2x32xf32>
    %273 = arith.addf %271, %272 : vector<2x32xf32>
    %c8_i32 = arith.constant 8 : i32
    %c0_60 = arith.constant 0 : index
    %c0_61 = arith.constant 0 : index
    %274 = vector.load %arg5[%c0_60, %c0_61] : memref<32x1xf32, #tpu.memory_space<vmem>>, vector<32x1xf32>
    %cst_62 = arith.constant dense<0.000000e+00> : vector<2x1xf32>
    %275 = tpu.matmul %273, %274, %cst_62 {dimension_numbers = #tpu.dot_dimension_numbers<[1], [0], [0], [1], [0, 0, 1, 1], [], []>} : vector<2x32xf32>, vector<32x1xf32>, vector<2x1xf32> -> vector<2x1xf32>
    %c0_63 = arith.constant 0 : index
    %c0_64 = arith.constant 0 : index
    %276 = vector.load %arg6[%c0_63, %c0_64] : memref<1x1xf32, #tpu.memory_space<vmem>>, vector<1x1xf32>
    %277 = vector.broadcast %276 : vector<1x1xf32> to vector<2x1xf32>
    %278 = arith.addf %275, %277 : vector<2x1xf32>
    %c0_65 = arith.constant 0 : index
    %c0_66 = arith.constant 0 : index
    %279 = vector.load %arg7[%c0_65, %c0_66] : memref<2x1xf32, #tpu.memory_space<vmem>>, vector<2x1xf32>
    tpu.vector_store %arg7[%c0_65, %c0_66], %278 {strides = array<i32>} : memref<2x1xf32, #tpu.memory_space<vmem>>, vector<2x1xf32>,
    return
  }
}

</mosaic_0001>

<bundles_post_ra>
// kernel: gru_model_forward.1
= control target key start
LH: loop header
LB: loop body
LE: loop exit
PB: predicated region body
PF: predicated region fallthrough
CT: control target
= control target key end

     0   :  { %vm45_vm0 = vcmask 1043456   ;;  %vm38_vm1 = vcmask 31744   ;;  %v1343_v3 = vmov 0.0|0.0   ;;  %vm1344_vm2 = vmmov 0   ;;  %s1346_s15 = smov 64   ;;  %s1543_s1 = inlined_call_operand.vmem [shape: f32[4,96], index: 1, kind: input, shape index: {}]   ;;  %s1544_s0 = inlined_call_operand.vmem [shape: f32[16,4], index: 0, kind: input, shape index: {}]   ;;  %s1545_s2 = inlined_call_operand.vmem [shape: f32[32,96], index: 2, kind: input, shape index: {}]   ;;  %s1546_s4 = inlined_call_operand.vmem [shape: f32[1,32], index: 4, kind: input, shape index: {}]   ;;  %s1547_s3 = inlined_call_operand.vmem [shape: f32[1,96], index: 3, kind: input, shape index: {}]   ;;  %s1548_s5 = inlined_call_operand.vmem [shape: f32[32,1], index: 5, kind: input, shape index: {}]   ;;  %s1549_s6 = inlined_call_operand.<no memory space> [shape: f32[1,1], index: 6, kind: input, shape index: {}]   ;;  %s1550_s7 = inlined_call_operand.vmem [shape: f32[2,1], index: 7, kind: output, shape index: {}]  }
   0x1   :  { %v30_v0 = vld [vmem:[%s1543_s1] sm:$0xf]  ;;  %v29_v2 = vld [vmem:[%s1544_s0 + $0x8] sm:$0xff]  ;;  %1236 = vmatprep.subr.bf16.mxu1 %v1343_v3  ;;  %v129_v6 = vld [vmem:[%s1545_s2 + $0x10] sm:$0xff]  ;;  %v1345_v9 = vmov 0.0   ;;  %vm124_vm3 = vcmask 785408  }
   0x2   :  { %v28_v1 = vld [vmem:[%s1544_s0] sm:$0xff]  ;;  %1132 = vmatprep.subr.msk.mxu0 %vm45_vm0, %v30_v0  ;;  %v128_v5 = vld [vmem:[%s1545_s2 + $0x8] sm:$0xff]  ;;  %v130_v8 = vld [vmem:[%s1545_s2 + $0x18] sm:$0xff]  ;;  %1145 = vmatprep.mubr.msk.f32.mxu1 %vm1344_vm2, %v1345_v9  ;;  %vm133_vm4 = vcmask 261120   ;;  %vm1056_vm5 = vcmask 1024  }
   0x3   :  { %1134 = vmatprep.mubr.msk.f32.mxu0 %vm38_vm1, %v28_v1  ;;  %v127_v4 = vld [vmem:[%s1545_s2] sm:$0xff]  ;;  %1133 = vmatpush3.msk.msra.mxu0 %vm45_vm0, %v30_v0  ;;  %v1421_v11 = vpack.c.bf16 %v130_v8, %v129_v6 }
   0x4   :  { %v1408_v7 = vpack.c.bf16 %v128_v5, %v127_v4  ;;  %v1067_v10 = vld [vmem:[%s1546_s4] ss:$0 sm:$0xff]  ;;  %1135 = vmatmul.mubr.msk.f32.vlgmr.msra.gmra.mrb[0].mxu0 %vm38_vm1, %v29_v2  ;;  %1242 = vmatprep.subr.bf16.mxu0 %v1343_v3 }
   0x5   :  { %219 = vrot.lane.b32.xlu0 %v1067_v10, %s1346_s15  ;;  %1156 = vmatprep.mubr.msk.f32.mxu0 %vm1344_vm2, %v1345_v9  ;;  %v1062_v12 = vld [vmem:[%s1547_s3] ss:$0 sm:$0xff]  ;;  %s1347_s3 = smov 96  }
   0x6   :  { %1238 = vmatpush3.bf16.msra.mxu1 %v1408_v7  ;;  %1244 = vmatpush3.bf16.msra.mxu0 %v1408_v7 }
   0x7   :  { %1239 = vmatprep.subr.bf16.mxu1 %v1343_v3  ;;  %1245 = vmatprep.subr.bf16.mxu0 %v1343_v3 }
   0xa   :  { %1241 = vmatpush3.bf16.msra.mxu1 %v1421_v11  ;;  %1247 = vmatpush3.bf16.msra.mxu0 %v1421_v11 }
   0xb   :  { %1248 = vmatprep.subr.bf16.mxu1 %v1343_v3  ;;  %1254 = vmatprep.subr.bf16.mxu0 %v1343_v3 }
   0xd   :  { %1146 = vmatmul.mubr.f32.vlgmr.msra.gmra.mrb[0].mxu1 %v1345_v9 }
   0xe   :  { %1250 = vmatpush3.bf16.msra.mxu1 %v1408_v7  ;;  %1167 = vmatprep.mubr.msk.f32.mxu1 %vm1344_vm2, %v1345_v9 }
   0xf   :  { %1251 = vmatprep.subr.bf16.mxu1 %v1343_v3 }
  0x12   :  { %1253 = vmatpush3.bf16.msra.mxu1 %v1421_v11 }
  0x13   :  { %1260 = vmatprep.subr.bf16.mxu1 %v1343_v3 }
  0x77   :  { %v1443_v17 = vpop.permute.xlu0 %219 }
  0xd7   :  { %v1136_v13 = vpop.f32.mrb[0].mxu0 }
  0xd8   :  { %v121_v14 = vadd.f32 %v1136_v13, %v1062_v12  ;;  %v115_v15 = vpop.f32.mrb[1].mxu0 }
  0xd9   :  { %v116_v16 = vadd.f32 %v1062_v12, %v115_v15 }
  0xda   :  { %126 = vst.msk [vmem:[#allocation2 + $0x8] sm:$0xff] %vm124_vm3, %v121_v14 }
  0xdb   :  { %125 = vst.msk [vmem:[#allocation2] sm:$0xff] %vm124_vm3, %v116_v16 }
  0xe0   :  { %v203_v18 = vpop.f32.mrb[0].mxu1 }
  0xe1   :  { %v222_v19 = vadd.f32 %v1443_v17, %v203_v18  ;;  %v1147_v20 = vpop.f32.mrb[1].mxu1 }
  0xe2   :  { %v132_v21 = vld [vmem:[#allocation2] sm:$0x3]  ;;  %v243_v41 = vld [vmem:[#allocation2 + $0x2] sm:$0x3]  ;;  %v347_v61 = vld [vmem:[#allocation2 + $0x4] sm:$0x3] }
  0xe3   :  { %224 = vrot.lane.b32.xlu0 %v222_v19, %s1346_s15  ;;  %v207_v22 = vadd.f32 %v203_v18, %v132_v21 }
  0xe5   :  { %v1066_v23 = vmul.f32 -1.442695, %v207_v22  ;;  %v451_v22 = vld [vmem:[#allocation2 + $0x6] sm:$0x3] }
  0xe7   :  { %1295 = vpow2.f32 %v1066_v23 }
  0xf1   :  { %v1296_v24 = vpop.eup %1295 }
  0xf2   :  { %v211_v25 = vadd.f32 1.0, %v1296_v24 }
  0xf4   :  { %1297 = vrcp.f32 %v211_v25 }
  0xfe   :  { %v1298_v26 = vpop.eup %1297 }
  0xff   :  { %v234_v32 = vsub.f32 1.0, %v1298_v26  ;;  %v240_v34 = vmul.f32 0.0, %v1298_v26 }
 0x155   :  { %v225_v27 = vpop.permute.xlu0 %224 }
 0x156   :  { %v227_v28 = vmul.f32 %v1298_v26, %v225_v27 }
 0x158   :  { %229 = vrot.lane.b32.xlu1 %v227_v28, %s1346_s15 }
 0x1ca   :  { %v230_v29 = vpop.permute.xlu1 %229 }
 0x1cb   :  { %v232_v30 = vadd.f32 %v230_v29, %v132_v21 }
 0x1cd   :  { %1299 = vtanh.f32 %v232_v30 }
 0x1d7   :  { %v1300_v31 = vpop.eup %1299 }
 0x1d8   :  { %236 = vrot.lane.b32.xlu1 %v1300_v31, %s1347_s3 }
 0x24a   :  { %v237_v33 = vpop.permute.xlu1 %236 }
 0x24b   :  { %v239_v35 = vmul.f32 %v237_v33, %v234_v32 }
 0x24d   :  { %v241_v36 = vadd.f32 %v240_v34, %v239_v35 }
 0x24f   :  { %245 = vrot.lane.b32.xlu0 %v241_v36, %s1347_s3 }
 0x2c1   :  { %v246_v37 = vpop.permute.xlu0 %245 }
 0x2c2   :  { %1157 = vmatmul.mubr.msk.f32.vlgmr.msra.gmra.mrb[2].mxu0 %vm133_vm4, %v246_v37 }
 0x2c3   :  { %1256 = vmatpush3.bf16.msra.mxu0 %v1408_v7  ;;  %1178 = vmatprep.mubr.msk.f32.mxu0 %vm1344_vm2, %v1345_v9 }
 0x2c4   :  { %1257 = vmatprep.subr.bf16.mxu0 %v1343_v3 }
 0x2c7   :  { %1259 = vmatpush3.bf16.msra.mxu0 %v1421_v11 }
 0x2c8   :  { %1266 = vmatprep.subr.bf16.mxu0 %v1343_v3 }
 0x395   :  { %v315_v38 = vpop.f32.mrb[2].mxu0 }
 0x396   :  { %v326_v39 = vadd.f32 %v315_v38, %v1443_v17  ;;  %v1158_v40 = vpop.f32.mrb[3].mxu0  ;;  %v319_v42 = vadd.f32 %v315_v38, %v243_v41 }
 0x398   :  { %328 = vrot.lane.b32.xlu1 %v326_v39, %s1346_s15  ;;  %v1069_v43 = vmul.f32 -1.442695, %v319_v42  ;;  %v555_v42 = vld [vmem:[#allocation2 + $0x8] sm:$0x3] }
 0x39a   :  { %1301 = vpow2.f32 %v1069_v43 }
 0x3a4   :  { %v1302_v44 = vpop.eup %1301 }
 0x3a5   :  { %v323_v45 = vadd.f32 1.0, %v1302_v44 }
 0x3a7   :  { %1303 = vrcp.f32 %v323_v45 }
 0x3b1   :  { %v1304_v46 = vpop.eup %1303 }
 0x3b2   :  { %v338_v52 = vsub.f32 1.0, %v1304_v46  ;;  %v344_v54 = vmul.f32 %v1304_v46, %v241_v36 }
 0x40a   :  { %v329_v47 = vpop.permute.xlu1 %328 }
 0x40b   :  { %v331_v48 = vmul.f32 %v1304_v46, %v329_v47 }
 0x40d   :  { %333 = vrot.lane.b32.xlu0 %v331_v48, %s1346_s15 }
 0x47f   :  { %v334_v49 = vpop.permute.xlu0 %333 }
 0x480   :  { %v336_v50 = vadd.f32 %v334_v49, %v243_v41 }
 0x482   :  { %1305 = vtanh.f32 %v336_v50 }
 0x48c   :  { %v1306_v51 = vpop.eup %1305 }
 0x48d   :  { %340 = vrot.lane.b32.xlu1 %v1306_v51, %s1347_s3 }
 0x4ff   :  { %v341_v53 = vpop.permute.xlu1 %340 }
 0x500   :  { %v343_v55 = vmul.f32 %v341_v53, %v338_v52 }
 0x502   :  { %v345_v56 = vadd.f32 %v344_v54, %v343_v55 }
 0x504   :  { %349 = vrot.lane.b32.xlu0 %v345_v56, %s1347_s3 }
 0x576   :  { %v350_v57 = vpop.permute.xlu0 %349 }
 0x577   :  { %1168 = vmatmul.mubr.msk.f32.vlgmr.msra.gmra.mrb[2].mxu1 %vm133_vm4, %v350_v57 }
 0x578   :  { %1262 = vmatpush3.bf16.msra.mxu1 %v1408_v7  ;;  %1189 = vmatprep.mubr.msk.f32.mxu1 %vm1344_vm2, %v1345_v9 }
 0x579   :  { %1263 = vmatprep.subr.bf16.mxu1 %v1343_v3 }
 0x57c   :  { %1265 = vmatpush3.bf16.msra.mxu1 %v1421_v11 }
 0x57d   :  { %1272 = vmatprep.subr.bf16.mxu1 %v1343_v3 }
 0x64a   :  { %v419_v58 = vpop.f32.mrb[2].mxu1 }
 0x64b   :  { %v430_v59 = vadd.f32 %v419_v58, %v1443_v17  ;;  %v1169_v60 = vpop.f32.mrb[3].mxu1  ;;  %v423_v62 = vadd.f32 %v419_v58, %v347_v61 }
 0x64d   :  { %432 = vrot.lane.b32.xlu1 %v430_v59, %s1346_s15  ;;  %v1071_v63 = vmul.f32 -1.442695, %v423_v62  ;;  %v659_v62 = vld [vmem:[#allocation2 + $0xa] sm:$0x3] }
 0x64f   :  { %1307 = vpow2.f32 %v1071_v63 }
 0x659   :  { %v1308_v0 = vpop.eup %1307 }
 0x65a   :  { %v427_v1 = vadd.f32 1.0, %v1308_v0 }
 0x65c   :  { %1309 = vrcp.f32 %v427_v1 }
 0x666   :  { %v1310_v2 = vpop.eup %1309 }
 0x667   :  { %v442_v12 = vsub.f32 1.0, %v1310_v2  ;;  %v448_v14 = vmul.f32 %v1310_v2, %v345_v56 }
 0x6bf   :  { %v433_v4 = vpop.permute.xlu1 %432 }
 0x6c0   :  { %v435_v5 = vmul.f32 %v1310_v2, %v433_v4 }
 0x6c2   :  { %437 = vrot.lane.b32.xlu0 %v435_v5, %s1346_s15 }
 0x734   :  { %v438_v6 = vpop.permute.xlu0 %437 }
 0x735   :  { %v440_v8 = vadd.f32 %v438_v6, %v347_v61 }
 0x737   :  { %1311 = vtanh.f32 %v440_v8 }
 0x741   :  { %v1312_v10 = vpop.eup %1311 }
 0x742   :  { %444 = vrot.lane.b32.xlu1 %v1312_v10, %s1347_s3 }
 0x7b4   :  { %v445_v13 = vpop.permute.xlu1 %444 }
 0x7b5   :  { %v447_v15 = vmul.f32 %v445_v13, %v442_v12 }
 0x7b7   :  { %v449_v16 = vadd.f32 %v448_v14, %v447_v15 }
 0x7b9   :  { %453 = vrot.lane.b32.xlu0 %v449_v16, %s1347_s3 }
 0x82b   :  { %v454_v18 = vpop.permute.xlu0 %453 }
 0x82c   :  { %1179 = vmatmul.mubr.msk.f32.vlgmr.msra.gmra.mrb[4].mxu0 %vm133_vm4, %v454_v18 }
 0x82d   :  { %1268 = vmatpush3.bf16.msra.mxu0 %v1408_v7  ;;  %1200 = vmatprep.mubr.msk.f32.mxu0 %vm1344_vm2, %v1345_v9 }
 0x82e   :  { %1269 = vmatprep.subr.bf16.mxu0 %v1343_v3 }
 0x831   :  { %1271 = vmatpush3.bf16.msra.mxu0 %v1421_v11 }
 0x832   :  { %1278 = vmatprep.subr.bf16.mxu0 %v1343_v3 }
 0x8ff   :  { %v523_v19 = vpop.f32.mrb[4].mxu0 }
 0x900   :  { %v534_v20 = vadd.f32 %v523_v19, %v1443_v17  ;;  %v1180_v21 = vpop.f32.mrb[5].mxu0  ;;  %v527_v23 = vadd.f32 %v523_v19, %v451_v22 }
 0x901   :  { %v763_v21 = vld [vmem:[#allocation2 + $0xc] sm:$0x3] }
 0x902   :  { %536 = vrot.lane.b32.xlu1 %v534_v20, %s1346_s15  ;;  %v1073_v24 = vmul.f32 -1.442695, %v527_v23 }
 0x904   :  { %1313 = vpow2.f32 %v1073_v24 }
 0x90e   :  { %v1314_v25 = vpop.eup %1313 }
 0x90f   :  { %v531_v26 = vadd.f32 1.0, %v1314_v25 }
 0x911   :  { %1315 = vrcp.f32 %v531_v26 }
 0x91b   :  { %v1316_v27 = vpop.eup %1315 }
 0x91c   :  { %v546_v33 = vsub.f32 1.0, %v1316_v27  ;;  %v552_v35 = vmul.f32 %v1316_v27, %v449_v16 }
 0x974   :  { %v537_v28 = vpop.permute.xlu1 %536 }
 0x975   :  { %v539_v29 = vmul.f32 %v1316_v27, %v537_v28 }
 0x977   :  { %541 = vrot.lane.b32.xlu0 %v539_v29, %s1346_s15 }
 0x9e9   :  { %v542_v30 = vpop.permute.xlu0 %541 }
 0x9ea   :  { %v544_v31 = vadd.f32 %v542_v30, %v451_v22 }
 0x9ec   :  { %1317 = vtanh.f32 %v544_v31 }
 0x9f6   :  { %v1318_v32 = vpop.eup %1317 }
 0x9f7   :  { %548 = vrot.lane.b32.xlu1 %v1318_v32, %s1347_s3 }
 0xa69   :  { %v549_v34 = vpop.permute.xlu1 %548 }
 0xa6a   :  { %v551_v36 = vmul.f32 %v549_v34, %v546_v33 }
 0xa6c   :  { %v553_v37 = vadd.f32 %v552_v35, %v551_v36 }
 0xa6e   :  { %557 = vrot.lane.b32.xlu0 %v553_v37, %s1347_s3 }
 0xae0   :  { %v558_v38 = vpop.permute.xlu0 %557 }
 0xae1   :  { %1190 = vmatmul.mubr.msk.f32.vlgmr.msra.gmra.mrb[4].mxu1 %vm133_vm4, %v558_v38 }
 0xae2   :  { %1274 = vmatpush3.bf16.msra.mxu1 %v1408_v7  ;;  %1211 = vmatprep.mubr.msk.f32.mxu1 %vm1344_vm2, %v1345_v9 }
 0xae3   :  { %1275 = vmatprep.subr.bf16.mxu1 %v1343_v3 }
 0xae6   :  { %1277 = vmatpush3.bf16.msra.mxu1 %v1421_v11 }
 0xae7   :  { %1284 = vmatprep.subr.bf16.mxu1 %v1343_v3 }
 0xbb4   :  { %v627_v39 = vpop.f32.mrb[4].mxu1 }
 0xbb5   :  { %v638_v40 = vadd.f32 %v627_v39, %v1443_v17  ;;  %v1191_v41 = vpop.f32.mrb[5].mxu1  ;;  %v631_v43 = vadd.f32 %v627_v39, %v555_v42 }
 0xbb7   :  { %640 = vrot.lane.b32.xlu1 %v638_v40, %s1346_s15  ;;  %v1075_v44 = vmul.f32 -1.442695, %v631_v43  ;;  %v867_v40 = vld [vmem:[#allocation2 + $0xe] sm:$0x3] }
 0xbb9   :  { %1319 = vpow2.f32 %v1075_v44 }
 0xbc3   :  { %v1320_v45 = vpop.eup %1319 }
 0xbc4   :  { %v635_v46 = vadd.f32 1.0, %v1320_v45 }
 0xbc6   :  { %1321 = vrcp.f32 %v635_v46 }
 0xbd0   :  { %v1322_v47 = vpop.eup %1321 }
 0xbd1   :  { %v650_v53 = vsub.f32 1.0, %v1322_v47  ;;  %v656_v55 = vmul.f32 %v1322_v47, %v553_v37 }
 0xc29   :  { %v641_v48 = vpop.permute.xlu1 %640 }
 0xc2a   :  { %v643_v49 = vmul.f32 %v1322_v47, %v641_v48 }
 0xc2c   :  { %645 = vrot.lane.b32.xlu0 %v643_v49, %s1346_s15 }
 0xc9e   :  { %v646_v50 = vpop.permute.xlu0 %645 }
 0xc9f   :  { %v648_v51 = vadd.f32 %v646_v50, %v555_v42  ;;  %v971_v50 = vld [vmem:[%s1548_s5 + $0x8] sm:$0xff] }
 0xca1   :  { %1323 = vtanh.f32 %v648_v51  ;;  %v972_v51 = vld [vmem:[%s1548_s5 + $0x10] sm:$0xff] }
 0xcab   :  { %v1324_v52 = vpop.eup %1323 }
 0xcac   :  { %652 = vrot.lane.b32.xlu1 %v1324_v52, %s1347_s3 }
 0xd1e   :  { %v653_v54 = vpop.permute.xlu1 %652 }
 0xd1f   :  { %v655_v56 = vmul.f32 %v653_v54, %v650_v53  ;;  %v973_v53 = vld [vmem:[%s1548_s5 + $0x18] sm:$0xff] }
 0xd20   :  { %v1288_v54 = vpack.c.bf16 %v973_v53, %v972_v51 }
 0xd21   :  { %v657_v57 = vadd.f32 %v656_v55, %v655_v56  ;;  %v12_v56 = vstv %s1549_s6 }
 0xd22   :  { %13 = vst [vmem:[#allocation3] sm:$0x1] %v12_v56 }
 0xd23   :  { %661 = vrot.lane.b32.xlu0 %v657_v57, %s1347_s3 }
 0xd95   :  { %v662_v58 = vpop.permute.xlu0 %661 }
 0xd96   :  { %1201 = vmatmul.mubr.msk.f32.vlgmr.msra.gmra.mrb[6].mxu0 %vm133_vm4, %v662_v58 }
 0xd97   :  { %1280 = vmatpush3.bf16.msra.mxu0 %v1408_v7  ;;  %1222 = vmatprep.mubr.msk.f32.mxu0 %vm1344_vm2, %v1345_v9 }
 0xd98   :  { %1281 = vmatprep.subr.bf16.mxu0 %v1343_v3 }
 0xd9b   :  { %1283 = vmatpush3.bf16.msra.mxu0 %v1421_v11 }
 0xe69   :  { %v731_v59 = vpop.f32.mrb[6].mxu0 }
 0xe6a   :  { %v742_v60 = vadd.f32 %v731_v59, %v1443_v17  ;;  %v1202_v61 = vpop.f32.mrb[7].mxu0  ;;  %v735_v63 = vadd.f32 %v731_v59, %v659_v62 }
 0xe6c   :  { %744 = vrot.lane.b32.xlu1 %v742_v60, %s1346_s15  ;;  %v1077_v0 = vmul.f32 -1.442695, %v735_v63 }
 0xe6e   :  { %1325 = vpow2.f32 %v1077_v0 }
 0xe78   :  { %v1326_v1 = vpop.eup %1325 }
 0xe79   :  { %v739_v2 = vadd.f32 1.0, %v1326_v1 }
 0xe7b   :  { %1327 = vrcp.f32 %v739_v2 }
 0xe85   :  { %v1328_v7 = vpop.eup %1327 }
 0xe86   :  { %v754_v10 = vsub.f32 1.0, %v1328_v7  ;;  %v760_v13 = vmul.f32 %v1328_v7, %v657_v57 }
 0xede   :  { %v745_v4 = vpop.permute.xlu1 %744 }
 0xedf   :  { %v747_v5 = vmul.f32 %v1328_v7, %v745_v4 }
 0xee1   :  { %749 = vrot.lane.b32.xlu0 %v747_v5, %s1346_s15 }
 0xf53   :  { %v750_v6 = vpop.permute.xlu0 %749 }
 0xf54   :  { %v752_v11 = vadd.f32 %v750_v6, %v659_v62 }
 0xf56   :  { %1329 = vtanh.f32 %v752_v11 }
 0xf60   :  { %v1330_v8 = vpop.eup %1329 }
 0xf61   :  { %756 = vrot.lane.b32.xlu1 %v1330_v8, %s1347_s3 }
 0xfd3   :  { %v757_v12 = vpop.permute.xlu1 %756 }
 0xfd4   :  { %v759_v14 = vmul.f32 %v757_v12, %v754_v10 }
 0xfd6   :  { %v761_v15 = vadd.f32 %v760_v13, %v759_v14 }
 0xfd8   :  { %765 = vrot.lane.b32.xlu0 %v761_v15, %s1347_s3 }
0x104a   :  { %v766_v16 = vpop.permute.xlu0 %765 }
0x104b   :  { %1212 = vmatmul.mubr.msk.f32.vlgmr.msra.gmra.mrb[6].mxu1 %vm133_vm4, %v766_v16 }
0x104c   :  { %1233 = vmatprep.mubr.msk.f32.mxu1 %vm1344_vm2, %v1345_v9 }
0x111e   :  { %v835_v18 = vpop.f32.mrb[6].mxu1 }
0x111f   :  { %v846_v19 = vadd.f32 %v835_v18, %v1443_v17  ;;  %v1213_v20 = vpop.f32.mrb[7].mxu1  ;;  %v839_v22 = vadd.f32 %v835_v18, %v763_v21 }
0x1121   :  { %848 = vrot.lane.b32.xlu1 %v846_v19, %s1346_s15  ;;  %v1079_v23 = vmul.f32 -1.442695, %v839_v22 }
0x1123   :  { %1331 = vpow2.f32 %v1079_v23 }
0x112d   :  { %v1332_v24 = vpop.eup %1331 }
0x112e   :  { %v843_v25 = vadd.f32 1.0, %v1332_v24 }
0x1130   :  { %1333 = vrcp.f32 %v843_v25 }
0x113a   :  { %v1334_v26 = vpop.eup %1333 }
0x113b   :  { %v858_v31 = vsub.f32 1.0, %v1334_v26  ;;  %v864_v33 = vmul.f32 %v1334_v26, %v761_v15 }
0x1193   :  { %v849_v27 = vpop.permute.xlu1 %848 }
0x1194   :  { %v851_v28 = vmul.f32 %v1334_v26, %v849_v27 }
0x1196   :  { %853 = vrot.lane.b32.xlu0 %v851_v28, %s1346_s15 }
0x1208   :  { %v854_v29 = vpop.permute.xlu0 %853 }
0x1209   :  { %v856_v9 = vadd.f32 %v854_v29, %v763_v21 }
0x120b   :  { %1335 = vtanh.f32 %v856_v9 }
0x1215   :  { %v1336_v30 = vpop.eup %1335 }
0x1216   :  { %860 = vrot.lane.b32.xlu1 %v1336_v30, %s1347_s3 }
0x1288   :  { %v861_v32 = vpop.permute.xlu1 %860 }
0x1289   :  { %v863_v34 = vmul.f32 %v861_v32, %v858_v31 }
0x128b   :  { %v865_v35 = vadd.f32 %v864_v33, %v863_v34 }
0x128d   :  { %869 = vrot.lane.b32.xlu0 %v865_v35, %s1347_s3 }
0x12ff   :  { %v870_v36 = vpop.permute.xlu0 %869 }
0x1300   :  { %1223 = vmatmul.mubr.msk.f32.vlgmr.msra.gmra.mrb[8].mxu0 %vm133_vm4, %v870_v36 }
0x13d3   :  { %v939_v37 = vpop.f32.mrb[8].mxu0 }
0x13d4   :  { %v950_v38 = vadd.f32 %v939_v37, %v1443_v17  ;;  %v1224_v39 = vpop.f32.mrb[9].mxu0  ;;  %v943_v41 = vadd.f32 %v939_v37, %v867_v40  ;;  %v970_v17 = vld [vmem:[%s1548_s5] sm:$0xff] }
0x13d5   :  { %v1285_v52 = vpack.c.bf16 %v971_v50, %v970_v17 }
0x13d6   :  { %952 = vrot.lane.b32.xlu1 %v950_v38, %s1346_s15  ;;  %v1081_v42 = vmul.f32 -1.442695, %v943_v41 }
0x13d7   :  { %1286 = vmatpush3.bf16.msra.mxu1 %v1285_v52 }
0x13d8   :  { %1337 = vpow2.f32 %v1081_v42  ;;  %1287 = vmatprep.subr.bf16.mxu1 %v1343_v3  ;;  %v1082_v3 = vld [vmem:[#allocation3] ss:$0 sm:$0xff] }
0x13db   :  { %1289 = vmatpush3.bf16.msra.mxu1 %v1288_v54 }
0x13e2   :  { %v1338_v43 = vpop.eup %1337 }
0x13e3   :  { %v947_v44 = vadd.f32 1.0, %v1338_v43 }
0x13e5   :  { %1339 = vrcp.f32 %v947_v44 }
0x13ef   :  { %v1340_v45 = vpop.eup %1339 }
0x13f0   :  { %v962_v57 = vsub.f32 1.0, %v1340_v45  ;;  %v968_v59 = vmul.f32 %v1340_v45, %v865_v35 }
0x1448   :  { %v953_v46 = vpop.permute.xlu1 %952 }
0x1449   :  { %v955_v47 = vmul.f32 %v1340_v45, %v953_v46 }
0x144b   :  { %957 = vrot.lane.b32.xlu0 %v955_v47, %s1346_s15 }
0x14bd   :  { %v958_v48 = vpop.permute.xlu0 %957 }
0x14be   :  { %v960_v49 = vadd.f32 %v958_v48, %v867_v40 }
0x14c0   :  { %1341 = vtanh.f32 %v960_v49 }
0x14ca   :  { %v1342_v55 = vpop.eup %1341 }
0x14cb   :  { %964 = vrot.lane.b32.xlu1 %v1342_v55, %s1347_s3 }
0x153d   :  { %v965_v58 = vpop.permute.xlu1 %964 }
0x153e   :  { %v967_v60 = vmul.f32 %v965_v58, %v962_v57 }
0x1540   :  { %v969_v61 = vadd.f32 %v968_v59, %v967_v60 }
0x1542   :  { %982 = vrot.lane.b32.xlu0 %v969_v61, %s1347_s3 }
0x15b4   :  { %v983_v62 = vpop.permute.xlu0 %982 }
0x15b5   :  { %1234 = vmatmul.mubr.msk.f32.vlgmr.msra.gmra.mrb[8].mxu1 %vm133_vm4, %v983_v62 }
0x1688   :  { %v1052_v63 = vpop.f32.mrb[8].mxu1 }
0x1689   :  { %v1053_v0 = vadd.f32 %v1082_v3, %v1052_v63  ;;  %v1235_v1 = vpop.f32.mrb[9].mxu1 }
0x168b   :  { %1057 = vst.msk [vmem:[%s1550_s7] sm:$0x3] %vm1056_vm5, %v1053_v0 }

</bundles_post_ra>
